<compile_context>
chip_gen: v7x
topology: tpu7x:2x2x1
jax: 0.10.0
libtpu: 0.0.40
codegen_flags: <defaults>
</compile_context>

<pallas_src>
import functools

import jax
import jax.numpy as jnp
import numpy as np
from jax.experimental import pallas as pl
from jax.experimental.pallas import tpu as pltpu


def _round_up(x, m):
    return (x + m - 1) // m * m


# Conservative feature-buffer budget / limit that fit every generation
# (v5e/v6e: 128 MiB physical VMEM, v7x: 64 MiB physical / 32 MiB default scoped).
_VMEM_FEATURE_BUDGET = 40 * 1024 * 1024
_VMEM_LIMIT_CAP = 56 * 1024 * 1024


def _vmem_feature_bytes(tile_m, tile_n, d_pad, q_bytes, p_bytes, mm_bytes,
                        dense_mask):
    est = 2 * tile_m * d_pad * q_bytes        # q row tile (double-buffered)
    est += 2 * d_pad * tile_n * p_bytes       # p^T column tile (double-buffered)
    est += tile_m * d_pad * mm_bytes          # cached normalized/scaled q
    if dense_mask:
        est += 2 * tile_m * tile_n            # int8 mask tile (double-buffered)
    est += 10 * tile_m * 128 * 4              # [tile_m,1] accs/outputs/labels (lane-padded)
    est += 8 * _round_up(tile_n, 128) * 4     # tiny (1, tile_n) label/bias rows
    return est


def _choose_tiles(batch, d_pad, q_bytes, p_bytes, mm_bytes, dense_mask):
    """Pick (tile_m, tile_n, b_pad)."""
    b8 = _round_up(batch, 8)

    def fits(tm, tn):
        return _vmem_feature_bytes(tm, tn, d_pad, q_bytes, p_bytes, mm_bytes,
                                   dense_mask) <= _VMEM_FEATURE_BUDGET

    if b8 <= 64 and fits(b8, b8):
        return b8, b8, b8                     # one tile; grid (1, 1)
    if b8 <= 512:
        # Two row tiles so the "parallel" row axis can use both v7x TensorCores;
        # tile_m kept a multiple of 32 so the int8 mask path stays layout-legal.
        tile_m = _round_up((b8 + 1) // 2, 32)
        b_pad = 2 * tile_m
        if fits(tile_m, b_pad):
            return tile_m, b_pad, b_pad
    # Large batch (or large hidden): fixed lane/MXU-aligned column tile; pick the
    # biggest row tile that fits the VMEM budget so each p^T column tile is
    # reused across more rows (p traffic = (b_pad/tile_m) * b_pad * d_pad bytes).
    tile_n = 256
    b_pad = _round_up(batch, tile_n)
    tile_m = 256
    for cand in (2048, 1024, 512, 256, 128, 64, 32):
        if cand <= b_pad and b_pad % cand == 0 and fits(cand, tile_n):
            tile_m = cand
            break
    if tile_m == b_pad and tile_m >= 64 and b_pad % (tile_m // 2) == 0:
        tile_m //= 2                          # ensure >= 2 row tiles (megacore)
    # TODO(synk): for very large hidden sizes (d_pad >= ~8192) a D-chunk inner
    # loop (K grid axis) would be needed to stay inside v7x's 64 MiB VMEM.
    return tile_m, tile_n, b_pad


def _contrast_loss_kernel(*refs, inv_temp, temperature, scale_by_temperature,
                          mask_from_labels, needs_col_bias):
    it = iter(refs)
    if mask_from_labels:
        lbl_row_ref = next(it)
        lbl_col_ref = next(it)
    else:
        mask_ref = next(it)
    bias_ref = next(it) if needs_col_bias else None
    q_ref = next(it)
    pt_ref = next(it)
    loss_ref = next(it)
    valid_ref = next(it)
    qn_sc = next(it)
    m_sc = next(it)
    l_sc = next(it)
    pd_sc = next(it)
    np_sc = next(it)

    j = pl.program_id(1)
    nj = pl.num_programs(1)

    @pl.when(j == 0)
    def _init():
        # Normalize q once per row tile; fold 1/temperature into the normalized
        # rows ([tile_m, D] multiply instead of a [B, B] divide). rsqrt -> EUP.
        q = q_ref[...].astype(jnp.float32)
        ss = jnp.sum(q * q, axis=1, keepdims=True)
        qn = q * (jax.lax.rsqrt(jnp.maximum(ss, 1e-24)) * inv_temp)
        qn_sc[...] = qn.astype(qn_sc.dtype)
        m_sc[...] = jnp.full_like(m_sc, -1e30)
        l_sc[...] = jnp.zeros_like(l_sc)
        pd_sc[...] = jnp.zeros_like(pd_sc)
        np_sc[...] = jnp.zeros_like(np_sc)

    # anchor_dot_contrast tile: (q_n / T) @ p^T -> [tile_m, tile_n] on the MXU.
    # p is pre-transposed in the wrapper, so this is a plain [M,K]@[K,N]
    # contraction (no per-step XLU transpose of the p tile).
    adc = jnp.dot(qn_sc[...], pt_ref[...], preferred_element_type=jnp.float32)

    if mask_from_labels:
        # Padded rows/cols carry sentinel labels (or NaN) that never compare
        # equal, so no per-step iota / padding-mask VPU work is needed.
        pos = (lbl_row_ref[...] == lbl_col_ref[...]).astype(jnp.float32)
    else:
        pos = mask_ref[...].astype(jnp.float32)

    if needs_col_bias:
        adc_lse = adc + bias_ref[...]   # 0 on real columns, -1e30 on padded ones
    else:
        adc_lse = adc

    # Online log-sum-exp over column tiles (the torch denominator is the sum of
    # ALL exp_logits because positives_mask + negatives_mask == 1).
    m_prev = m_sc[...]
    m_new = jnp.maximum(m_prev, jnp.max(adc_lse, axis=1, keepdims=True))
    l_sc[...] = (jnp.exp(m_prev - m_new) * l_sc[...]
                 + jnp.sum(jnp.exp(adc_lse - m_new), axis=1, keepdims=True))
    m_sc[...] = m_new
    # Linear accumulators need no rescaling.
    pd_sc[...] = pd_sc[...] + jnp.sum(pos * adc, axis=1, keepdims=True)
    np_sc[...] = np_sc[...] + jnp.sum(pos, axis=1, keepdims=True)

    @pl.when(j == nj - 1)
    def _finalize():
        num_pos = np_sc[...]                                  # [tile_m, 1]
        lse = m_sc[...] + jnp.log(l_sc[...])                  # log(denominator)
        # sum(pos * log_probs) = sum(pos * adc) - num_pos * logsumexp(adc)
        row_sum = pd_sc[...] - num_pos * lse
        valid = num_pos > 0.0
        # Exact divide on a [tile_m, 1] vector (cheap); approx reciprocal would
        # break the 1e-5 comparison against the torch math.
        per_row = jnp.where(valid, row_sum / jnp.where(valid, num_pos, 1.0), 0.0)
        loss_rows = -per_row
        if scale_by_temperature:
            loss_rows = loss_rows * temperature
        loss_ref[...] = loss_rows
        valid_ref[...] = valid.astype(jnp.float32)


def contrast_loss(features_q, features_p, labels=None, mask=None, *,
                  temperature=0.5, scale_by_temperature=True,
                  matmul_dtype=None):
    """JAX/Pallas equivalent of ContrastLoss.forward (returns a scalar loss)."""
    features_q = jnp.asarray(features_q)
    features_p = jnp.asarray(features_p)
    batch_size, hidden = features_q.shape

    if labels is not None and mask is not None:
        raise ValueError('Cannot define both `labels` and `mask`')

    mask_from_labels = mask is None
    if mask_from_labels:
        if labels is None:
            labels = jnp.arange(batch_size, dtype=jnp.int32)   # == identity mask
        else:
            labels = jnp.reshape(jnp.asarray(labels), (-1,))
            if labels.shape[0] != batch_size:
                raise ValueError('Num of labels does not match num of features_q')
            if jnp.issubdtype(labels.dtype, jnp.integer):
                labels = labels.astype(jnp.int32)
            else:
                labels = labels.astype(jnp.float32)

    # MXU input precision: bf16 when both feature inputs are bf16 (f32 matmul is
    # a ~3-4x more expensive multi-pass MXU decomposition), f32 otherwise so the
    # 1e-5 parity with the torch f32 math is preserved.
    if matmul_dtype is None:
        matmul_dtype = (jnp.bfloat16
                        if (features_q.dtype == jnp.bfloat16
                            and features_p.dtype == jnp.bfloat16)
                        else jnp.float32)
    matmul_dtype = jnp.dtype(matmul_dtype)

    d_pad = max(_round_up(hidden, 128), 128)   # lane-aligned; zero pad is exact
    q_bytes = features_q.dtype.itemsize
    p_bytes = matmul_dtype.itemsize
    mm_bytes = matmul_dtype.itemsize
    tile_m, tile_n, b_pad = _choose_tiles(batch_size, d_pad, q_bytes, p_bytes,
                                          mm_bytes, not mask_from_labels)
    needs_col_bias = b_pad != batch_size

    def pad2(x, rows, cols):
        return jnp.pad(x, ((0, rows - x.shape[0]), (0, cols - x.shape[1])))

    q = pad2(features_q, b_pad, d_pad)
    # Pre-transpose p once in the wrapper (amortized over all row tiles).
    p_t = pad2(features_p, b_pad, d_pad).astype(matmul_dtype).T

    inputs = []
    in_specs = []
    if mask_from_labels:
        pad_rows = b_pad - batch_size
        if jnp.issubdtype(labels.dtype, jnp.integer):
            row_pad = jnp.iinfo(jnp.int32).min       # sentinels that never match a
            col_pad = jnp.iinfo(jnp.int32).min + 1   # real label or each other
        else:
            row_pad = jnp.nan                        # NaN never compares equal
            col_pad = jnp.nan
        lbl_row = jnp.pad(labels, (0, pad_rows),
                          constant_values=row_pad).reshape(b_pad, 1)
        lbl_col = jnp.pad(labels, (0, pad_rows),
                          constant_values=col_pad).reshape(1, b_pad)
        inputs += [lbl_row, lbl_col]
        in_specs += [pl.BlockSpec((tile_m, 1), lambda i, j: (i, 0)),
                     pl.BlockSpec((1, tile_n), lambda i, j: (0, j))]
    else:
        # Dense-mask fallback: binary mask streamed as int8 (4x less HBM traffic
        # than a padded f32 mask).
        mask_i8 = pad2(jnp.asarray(mask), b_pad, b_pad).astype(jnp.int8)
        inputs += [mask_i8]
        in_specs += [pl.BlockSpec((tile_m, tile_n), lambda i, j: (i, j))]
    if needs_col_bias:
        col_bias = jnp.where(jnp.arange(b_pad) < batch_size, 0.0,
                             -1e30).astype(jnp.float32).reshape(1, b_pad)
        inputs += [col_bias]
        in_specs += [pl.BlockSpec((1, tile_n), lambda i, j: (0, j))]
    inputs += [q, p_t]
    in_specs += [pl.BlockSpec((tile_m, d_pad), lambda i, j: (i, 0)),
                 pl.BlockSpec((d_pad, tile_n), lambda i, j: (0, j))]

    out_shape = (jax.ShapeDtypeStruct((b_pad, 1), jnp.float32),
                 jax.ShapeDtypeStruct((b_pad, 1), jnp.float32))
    out_specs = (pl.BlockSpec((tile_m, 1), lambda i, j: (i, 0)),
                 pl.BlockSpec((tile_m, 1), lambda i, j: (i, 0)))

    scratch_shapes = [
        pltpu.VMEM((tile_m, d_pad), matmul_dtype),   # normalized/scaled q (cached)
        pltpu.VMEM((tile_m, 1), jnp.float32),        # running max
        pltpu.VMEM((tile_m, 1), jnp.float32),        # running sum of exp
        pltpu.VMEM((tile_m, 1), jnp.float32),        # running sum(pos * adc)
        pltpu.VMEM((tile_m, 1), jnp.float32),        # running num_positives
    ]

    kernel = functools.partial(
        _contrast_loss_kernel,
        inv_temp=float(1.0 / temperature), temperature=float(temperature),
        scale_by_temperature=bool(scale_by_temperature),
        mask_from_labels=mask_from_labels, needs_col_bias=needs_col_bias)

    vmem_est = _vmem_feature_bytes(tile_m, tile_n, d_pad, q_bytes, p_bytes,
                                   mm_bytes, not mask_from_labels)
    vmem_limit = int(min(_VMEM_LIMIT_CAP,
                         max(32 * 1024 * 1024,
                             int(vmem_est * 1.25) + (2 << 20))))

    n_row_tiles = b_pad // tile_m
    cost = pl.CostEstimate(
        flops=int(2 * b_pad * b_pad * d_pad),
        transcendentals=int(b_pad * b_pad),
        bytes_accessed=int(b_pad * d_pad * q_bytes
                           + n_row_tiles * b_pad * d_pad * p_bytes
                           + (0 if mask_from_labels else n_row_tiles * b_pad * b_pad)
                           + b_pad * 8))

    loss_rows, valid_rows = pl.pallas_call(
        kernel,
        out_shape=out_shape,
        grid=(b_pad // tile_m, b_pad // tile_n),
        in_specs=in_specs,
        out_specs=out_specs,
        scratch_shapes=scratch_shapes,
        compiler_params=pltpu.CompilerParams(
            dimension_semantics=("parallel", "arbitrary"),
            vmem_limit_bytes=vmem_limit),
        cost_estimate=cost,
    )(*inputs)

    # Tiny O(B) final reduction outside the kernel (megacore-safe scalar).
    total = jnp.sum(loss_rows)
    count = jnp.sum(valid_rows)
    # TODO(synk): torch raises on NaN in log_probs / when no row has positives;
    # there is no in-kernel exception path, so count == 0 yields NaN instead.
    return total / count


def _reference_loss(q, p, mask, temperature=0.5, scale_by_temperature=True):
    # Pure-JAX reference mirroring the PyTorch forward, for sanity checks.
    q = q / jnp.maximum(jnp.linalg.norm(q, axis=1, keepdims=True), 1e-12)
    adc = (q @ p.T) / temperature
    logits = adc - jnp.max(adc, axis=1, keepdims=True)
    exp_logits = jnp.exp(logits)
    pos = mask
    neg = 1.0 - mask
    num_pos = jnp.sum(pos, axis=1)
    denom = (jnp.sum(exp_logits * neg, axis=1, keepdims=True)
             + jnp.sum(exp_logits * pos, axis=1, keepdims=True))
    log_probs = logits - jnp.log(denom)
    row = jnp.sum(log_probs * pos, axis=1)
    valid = num_pos > 0
    per_row = jnp.where(valid, row / jnp.where(valid, num_pos, 1.0), 0.0)
    loss = -per_row
    if scale_by_temperature:
        loss = loss * temperature
    return jnp.sum(jnp.where(valid, loss, 0.0)) / jnp.sum(valid)


if __name__ == "__main__":
    key = jax.random.PRNGKey(0)
    kq, kp, kl = jax.random.split(key, 3)

    # Case 1: default (identity mask), B=8, D=32 -> single tile, no padding.
    B, D = 8, 32
    fq = jax.random.normal(kq, (B, D), dtype=jnp.float32)
    fp = jax.random.normal(kp, (B, D), dtype=jnp.float32)
    loss1 = jax.block_until_ready(contrast_loss(fq, fp, temperature=0.5,
                                                scale_by_temperature=True))
    ref1 = _reference_loss(fq, fp, jnp.eye(B, dtype=jnp.float32))
    np.testing.assert_allclose(np.asarray(loss1), np.asarray(ref1),
                               rtol=1e-5, atol=1e-5)

    # Case 2: labels path + batch padding (B=10 -> padded tile, sentinel labels).
    B2 = 10
    fq2 = jax.random.normal(kq, (B2, D), dtype=jnp.float32)
    fp2 = jax.random.normal(kp, (B2, D), dtype=jnp.float32)
    labels2 = jax.random.randint(kl, (B2,), 0, 3)
    loss2 = jax.block_until_ready(
        contrast_loss(fq2, fp2, labels=labels2, temperature=0.3,
                      scale_by_temperature=False))
    mask2 = (labels2[:, None] == labels2[None, :]).astype(jnp.float32)
    ref2 = _reference_loss(fq2, fp2, mask2, temperature=0.3,
                           scale_by_temperature=False)
    np.testing.assert_allclose(np.asarray(loss2), np.asarray(ref2),
                               rtol=1e-5, atol=1e-5)

    # Case 3: explicit dense-mask (int8 streamed) fallback path.
    loss3 = jax.block_until_ready(
        contrast_loss(fq2, fp2, mask=mask2, temperature=0.3,
                      scale_by_temperature=False))
    np.testing.assert_allclose(np.asarray(loss3), np.asarray(ref2),
                               rtol=1e-5, atol=1e-5)

    # Case 4: labels path with two row tiles + column padding (B=100 -> 2x64 rows).
    B4 = 100
    fq4 = jax.random.normal(kq, (B4, D), dtype=jnp.float32)
    fp4 = jax.random.normal(kp, (B4, D), dtype=jnp.float32)
    labels4 = jax.random.randint(kl, (B4,), 0, 7)
    loss4 = jax.block_until_ready(
        contrast_loss(fq4, fp4, labels=labels4, temperature=0.5,
                      scale_by_temperature=True))
    mask4 = (labels4[:, None] == labels4[None, :]).astype(jnp.float32)
    ref4 = _reference_loss(fq4, fp4, mask4, temperature=0.5,
                           scale_by_temperature=True)
    np.testing.assert_allclose(np.asarray(loss4), np.asarray(ref4),
                               rtol=1e-5, atol=1e-5)

    # Case 5: bf16 inputs exercise the bf16-MXU path (looser tolerance).
    fq5 = fq2.astype(jnp.bfloat16)
    fp5 = fp2.astype(jnp.bfloat16)
    loss5 = jax.block_until_ready(
        contrast_loss(fq5, fp5, labels=labels2, temperature=0.3,
                      scale_by_temperature=False))
    ref5 = _reference_loss(fq5.astype(jnp.float32), fp5.astype(jnp.float32),
                           mask2, temperature=0.3, scale_by_temperature=False)
    np.testing.assert_allclose(np.asarray(loss5), np.asarray(ref5),
                               rtol=5e-2, atol=5e-2)

    print("KERNEL_OK")
</pallas_src>

<mosaic_0001>
module attributes {stable_mosaic.version = 11 : i64} {
  func.func @_contrast_loss_kernel(%arg0: i32, %arg1: i32, %arg2: memref<8x1xi32, #tpu.memory_space<vmem>>, %arg3: memref<1x8xi32, #tpu.memory_space<vmem>>, %arg4: memref<8x128xf32, #tpu.memory_space<vmem>>, %arg5: memref<128x8xf32, #tpu.memory_space<vmem>>, %arg6: memref<8x1xf32, #tpu.memory_space<vmem>>, %arg7: memref<8x1xf32, #tpu.memory_space<vmem>>, %arg8: memref<8x128xf32, #tpu.memory_space<vmem>>, %arg9: memref<8x1xf32, #tpu.memory_space<vmem>>, %arg10: memref<8x1xf32, #tpu.memory_space<vmem>>, %arg11: memref<8x1xf32, #tpu.memory_space<vmem>>, %arg12: memref<8x1xf32, #tpu.memory_space<vmem>>) attributes {dimension_semantics = [#tpu.dimension_semantics<parallel>, #tpu.dimension_semantics<arbitrary>], iteration_bounds = array<i64: 1, 1>, scalar_prefetch = 0 : i64, scratch_operands = 5 : i64, tpu.core_type = #tpu.core_type<tc>, window_params = [{transform_indices = @transform_0, window_bounds = array<i64: 8, 1>}, {transform_indices = @transform_1, window_bounds = array<i64: 1, 8>}, {transform_indices = @transform_2, window_bounds = array<i64: 8, 128>}, {transform_indices = @transform_3, window_bounds = array<i64: 128, 8>}, {transform_indices = @transform_4, window_bounds = array<i64: 8, 1>}, {transform_indices = @transform_5, window_bounds = array<i64: 8, 1>}]} {
    %c0_i32 = arith.constant 0 : i32
    %0 = arith.cmpi eq, %arg1, %c0_i32 : i32
    %1 = arith.extui %0 : i1 to i32
    %c0_i32_0 = arith.constant 0 : i32
    %2 = arith.cmpi ne, %1, %c0_i32_0 : i32
    scf.if %2 {
      %c0_30 = arith.constant 0 : index
      %c0_31 = arith.constant 0 : index
      %43 = vector.load %arg4[%c0_30, %c0_31] : memref<8x128xf32, #tpu.memory_space<vmem>>, vector<8x128xf32>
      %44 = arith.mulf %43, %43 : vector<8x128xf32>
      %cst_32 = arith.constant dense<0.000000e+00> : vector<8xf32>
      %45 = vector.multi_reduction <add>, %44, %cst_32 [1] : vector<8x128xf32> to vector<8xf32>
      %46 = vector.shape_cast %45 : vector<8xf32> to vector<8x1xf32>
      %cst_33 = arith.constant 1.000000e-24 : f32
      %47 = vector.broadcast %cst_33 : f32 to vector<8x1xf32>
      %48 = arith.maximumf %46, %47 : vector<8x1xf32>
      %49 = math.rsqrt %48 : vector<8x1xf32>
      %cst_34 = arith.constant 2.000000e+00 : f32
      %50 = vector.broadcast %cst_34 : f32 to vector<8x1xf32>
      %51 = arith.mulf %49, %50 : vector<8x1xf32>
      %52 = vector.broadcast %51 : vector<8x1xf32> to vector<8x128xf32>
      %53 = arith.mulf %43, %52 : vector<8x128xf32>
      %c0_35 = arith.constant 0 : index
      %c0_36 = arith.constant 0 : index
      %54 = vector.load %arg8[%c0_35, %c0_36] : memref<8x128xf32, #tpu.memory_space<vmem>>, vector<8x128xf32>
      tpu.vector_store %arg8[%c0_35, %c0_36], %53 {strides = array<i32>} : memref<8x128xf32, #tpu.memory_space<vmem>>, vector<8x128xf32>,
      %cst_37 = arith.constant -1.000000e+30 : f32
      %55 = vector.broadcast %cst_37 : f32 to vector<8x1xf32>
      %c0_38 = arith.constant 0 : index
      %c0_39 = arith.constant 0 : index
      %56 = vector.load %arg9[%c0_38, %c0_39] : memref<8x1xf32, #tpu.memory_space<vmem>>, vector<8x1xf32>
      tpu.vector_store %arg9[%c0_38, %c0_39], %55 {strides = array<i32>} : memref<8x1xf32, #tpu.memory_space<vmem>>, vector<8x1xf32>,
      %cst_40 = arith.constant 0.000000e+00 : f32
      %57 = vector.broadcast %cst_40 : f32 to vector<8x1xf32>
      %c0_41 = arith.constant 0 : index
      %c0_42 = arith.constant 0 : index
      %58 = vector.load %arg10[%c0_41, %c0_42] : memref<8x1xf32, #tpu.memory_space<vmem>>, vector<8x1xf32>
      tpu.vector_store %arg10[%c0_41, %c0_42], %57 {strides = array<i32>} : memref<8x1xf32, #tpu.memory_space<vmem>>, vector<8x1xf32>,
      %cst_43 = arith.constant 0.000000e+00 : f32
      %59 = vector.broadcast %cst_43 : f32 to vector<8x1xf32>
      %c0_44 = arith.constant 0 : index
      %c0_45 = arith.constant 0 : index
      %60 = vector.load %arg11[%c0_44, %c0_45] : memref<8x1xf32, #tpu.memory_space<vmem>>, vector<8x1xf32>
      tpu.vector_store %arg11[%c0_44, %c0_45], %59 {strides = array<i32>} : memref<8x1xf32, #tpu.memory_space<vmem>>, vector<8x1xf32>,
      %cst_46 = arith.constant 0.000000e+00 : f32
      %61 = vector.broadcast %cst_46 : f32 to vector<8x1xf32>
      %c0_47 = arith.constant 0 : index
      %c0_48 = arith.constant 0 : index
      %62 = vector.load %arg12[%c0_47, %c0_48] : memref<8x1xf32, #tpu.memory_space<vmem>>, vector<8x1xf32>
      tpu.vector_store %arg12[%c0_47, %c0_48], %61 {strides = array<i32>} : memref<8x1xf32, #tpu.memory_space<vmem>>, vector<8x1xf32>,
    } else {
    }
    %c0 = arith.constant 0 : index
    %c0_1 = arith.constant 0 : index
    %3 = vector.load %arg8[%c0, %c0_1] : memref<8x128xf32, #tpu.memory_space<vmem>>, vector<8x128xf32>
    %c0_2 = arith.constant 0 : index
    %c0_3 = arith.constant 0 : index
    %4 = vector.load %arg5[%c0_2, %c0_3] : memref<128x8xf32, #tpu.memory_space<vmem>>, vector<128x8xf32>
    %cst = arith.constant dense<0.000000e+00> : vector<8x8xf32>
    %5 = tpu.matmul %3, %4, %cst {dimension_numbers = #tpu.dot_dimension_numbers<[1], [0], [0], [1], [0, 0, 1, 1], [], []>} : vector<8x128xf32>, vector<128x8xf32>, vector<8x8xf32> -> vector<8x8xf32>
    %c0_4 = arith.constant 0 : index
    %c0_5 = arith.constant 0 : index
    %6 = vector.load %arg2[%c0_4, %c0_5] : memref<8x1xi32, #tpu.memory_space<vmem>>, vector<8x1xi32>
    %c0_6 = arith.constant 0 : index
    %c0_7 = arith.constant 0 : index
    %7 = vector.load %arg3[%c0_6, %c0_7] : memref<1x8xi32, #tpu.memory_space<vmem>>, vector<1x8xi32>
    %8 = vector.broadcast %6 : vector<8x1xi32> to vector<8x8xi32>
    %9 = vector.broadcast %7 : vector<1x8xi32> to vector<8x8xi32>
    %10 = arith.cmpi eq, %8, %9 : vector<8x8xi32>
    %11 = arith.extui %10 : vector<8x8xi1> to vector<8x8xi32>
    %12 = arith.sitofp %11 : vector<8x8xi32> to vector<8x8xf32>
    %c0_8 = arith.constant 0 : index
    %c0_9 = arith.constant 0 : index
    %13 = vector.load %arg9[%c0_8, %c0_9] : memref<8x1xf32, #tpu.memory_space<vmem>>, vector<8x1xf32>
    %cst_10 = arith.constant dense<0xFF800000> : vector<8xf32>
    %14 = vector.multi_reduction <maximumf>, %5, %cst_10 [1] : vector<8x8xf32> to vector<8xf32>
    %15 = vector.shape_cast %14 : vector<8xf32> to vector<8x1xf32>
    %16 = arith.maximumf %13, %15 : vector<8x1xf32>
    %17 = arith.subf %13, %16 : vector<8x1xf32>
    %18 = math.exp %17 : vector<8x1xf32>
    %c0_11 = arith.constant 0 : index
    %c0_12 = arith.constant 0 : index
    %19 = vector.load %arg10[%c0_11, %c0_12] : memref<8x1xf32, #tpu.memory_space<vmem>>, vector<8x1xf32>
    %20 = arith.mulf %18, %19 : vector<8x1xf32>
    %21 = vector.broadcast %16 : vector<8x1xf32> to vector<8x8xf32>
    %22 = arith.subf %5, %21 : vector<8x8xf32>
    %23 = math.exp %22 : vector<8x8xf32>
    %cst_13 = arith.constant dense<0.000000e+00> : vector<8xf32>
    %24 = vector.multi_reduction <add>, %23, %cst_13 [1] : vector<8x8xf32> to vector<8xf32>
    %25 = vector.shape_cast %24 : vector<8xf32> to vector<8x1xf32>
    %26 = arith.addf %20, %25 : vector<8x1xf32>
    %c0_14 = arith.constant 0 : index
    %c0_15 = arith.constant 0 : index
    %27 = vector.load %arg10[%c0_14, %c0_15] : memref<8x1xf32, #tpu.memory_space<vmem>>, vector<8x1xf32>
    tpu.vector_store %arg10[%c0_14, %c0_15], %26 {strides = array<i32>} : memref<8x1xf32, #tpu.memory_space<vmem>>, vector<8x1xf32>,
    %c0_16 = arith.constant 0 : index
    %c0_17 = arith.constant 0 : index
    %28 = vector.load %arg9[%c0_16, %c0_17] : memref<8x1xf32, #tpu.memory_space<vmem>>, vector<8x1xf32>
    tpu.vector_store %arg9[%c0_16, %c0_17], %16 {strides = array<i32>} : memref<8x1xf32, #tpu.memory_space<vmem>>, vector<8x1xf32>,
    %c0_18 = arith.constant 0 : index
    %c0_19 = arith.constant 0 : index
    %29 = vector.load %arg11[%c0_18, %c0_19] : memref<8x1xf32, #tpu.memory_space<vmem>>, vector<8x1xf32>
    %30 = arith.mulf %12, %5 : vector<8x8xf32>
    %cst_20 = arith.constant dense<0.000000e+00> : vector<8xf32>
    %31 = vector.multi_reduction <add>, %30, %cst_20 [1] : vector<8x8xf32> to vector<8xf32>
    %32 = vector.shape_cast %31 : vector<8xf32> to vector<8x1xf32>
    %33 = arith.addf %29, %32 : vector<8x1xf32>
    %c0_21 = arith.constant 0 : index
    %c0_22 = arith.constant 0 : index
    %34 = vector.load %arg11[%c0_21, %c0_22] : memref<8x1xf32, #tpu.memory_space<vmem>>, vector<8x1xf32>
    tpu.vector_store %arg11[%c0_21, %c0_22], %33 {strides = array<i32>} : memref<8x1xf32, #tpu.memory_space<vmem>>, vector<8x1xf32>,
    %c0_23 = arith.constant 0 : index
    %c0_24 = arith.constant 0 : index
    %35 = vector.load %arg12[%c0_23, %c0_24] : memref<8x1xf32, #tpu.memory_space<vmem>>, vector<8x1xf32>
    %cst_25 = arith.constant dense<0.000000e+00> : vector<8xf32>
    %36 = vector.multi_reduction <add>, %12, %cst_25 [1] : vector<8x8xf32> to vector<8xf32>
    %37 = vector.shape_cast %36 : vector<8xf32> to vector<8x1xf32>
    %38 = arith.addf %35, %37 : vector<8x1xf32>
    %c0_26 = arith.constant 0 : index
    %c0_27 = arith.constant 0 : index
    %39 = vector.load %arg12[%c0_26, %c0_27] : memref<8x1xf32, #tpu.memory_space<vmem>>, vector<8x1xf32>
    tpu.vector_store %arg12[%c0_26, %c0_27], %38 {strides = array<i32>} : memref<8x1xf32, #tpu.memory_space<vmem>>, vector<8x1xf32>,
    %c0_i32_28 = arith.constant 0 : i32
    %40 = arith.cmpi eq, %arg1, %c0_i32_28 : i32
    %41 = arith.extui %40 : i1 to i32
    %c0_i32_29 = arith.constant 0 : i32
    %42 = arith.cmpi ne, %41, %c0_i32_29 : i32
    scf.if %42 {
      %c0_30 = arith.constant 0 : index
      %c0_31 = arith.constant 0 : index
      %43 = vector.load %arg12[%c0_30, %c0_31] : memref<8x1xf32, #tpu.memory_space<vmem>>, vector<8x1xf32>
      %c0_32 = arith.constant 0 : index
      %c0_33 = arith.constant 0 : index
      %44 = vector.load %arg9[%c0_32, %c0_33] : memref<8x1xf32, #tpu.memory_space<vmem>>, vector<8x1xf32>
      %c0_34 = arith.constant 0 : index
      %c0_35 = arith.constant 0 : index
      %45 = vector.load %arg10[%c0_34, %c0_35] : memref<8x1xf32, #tpu.memory_space<vmem>>, vector<8x1xf32>
      %46 = math.log %45 : vector<8x1xf32>
      %47 = arith.addf %44, %46 : vector<8x1xf32>
      %c0_36 = arith.constant 0 : index
      %c0_37 = arith.constant 0 : index
      %48 = vector.load %arg11[%c0_36, %c0_37] : memref<8x1xf32, #tpu.memory_space<vmem>>, vector<8x1xf32>
      %49 = arith.mulf %43, %47 : vector<8x1xf32>
      %50 = arith.subf %48, %49 : vector<8x1xf32>
      %cst_38 = arith.constant 0.000000e+00 : f32
      %51 = vector.broadcast %cst_38 : f32 to vector<8x1xf32>
      %52 = arith.cmpf ogt, %43, %51 : vector<8x1xf32>
      %cst_39 = arith.constant 1.000000e+00 : f32
      %53 = vector.broadcast %cst_39 : f32 to vector<8x1xf32>
      %54 = arith.select %52, %43, %53 : vector<8x1xi1>, vector<8x1xf32>
      %55 = arith.divf %50, %54 : vector<8x1xf32>
      %cst_40 = arith.constant 0.000000e+00 : f32
      %56 = vector.broadcast %cst_40 : f32 to vector<8x1xf32>
      %57 = arith.select %52, %55, %56 : vector<8x1xi1>, vector<8x1xf32>
      %cst_41 = arith.constant 0.000000e+00 : f32
      %58 = vector.broadcast %cst_41 : f32 to vector<8x1xf32>
      %59 = arith.subf %58, %57 : vector<8x1xf32>
      %cst_42 = arith.constant 5.000000e-01 : f32
      %60 = vector.broadcast %cst_42 : f32 to vector<8x1xf32>
      %61 = arith.mulf %59, %60 : vector<8x1xf32>
      %c0_43 = arith.constant 0 : index
      %c0_44 = arith.constant 0 : index
      %62 = vector.load %arg6[%c0_43, %c0_44] : memref<8x1xf32, #tpu.memory_space<vmem>>, vector<8x1xf32>
      tpu.vector_store %arg6[%c0_43, %c0_44], %61 {strides = array<i32>} : memref<8x1xf32, #tpu.memory_space<vmem>>, vector<8x1xf32>,
      %63 = arith.extui %52 : vector<8x1xi1> to vector<8x1xi32>
      %64 = arith.sitofp %63 : vector<8x1xi32> to vector<8x1xf32>
      %c0_45 = arith.constant 0 : index
      %c0_46 = arith.constant 0 : index
      %65 = vector.load %arg7[%c0_45, %c0_46] : memref<8x1xf32, #tpu.memory_space<vmem>>, vector<8x1xf32>
      tpu.vector_store %arg7[%c0_45, %c0_46], %64 {strides = array<i32>} : memref<8x1xf32, #tpu.memory_space<vmem>>, vector<8x1xf32>,
    } else {
    }
    return
  }
  func.func @transform_0(%arg0: i32, %arg1: i32) -> (i32, i32) {
    %c0_i32 = arith.constant 0 : i32
    %c0_i32_0 = arith.constant 0 : i32
    return %arg0, %c0_i32 : i32, i32
  }
  func.func @transform_1(%arg0: i32, %arg1: i32) -> (i32, i32) {
    %c0_i32 = arith.constant 0 : i32
    %c0_i32_0 = arith.constant 0 : i32
    return %c0_i32, %arg1 : i32, i32
  }
  func.func @transform_2(%arg0: i32, %arg1: i32) -> (i32, i32) {
    %c0_i32 = arith.constant 0 : i32
    %c0_i32_0 = arith.constant 0 : i32
    return %arg0, %c0_i32 : i32, i32
  }
  func.func @transform_3(%arg0: i32, %arg1: i32) -> (i32, i32) {
    %c0_i32 = arith.constant 0 : i32
    %c0_i32_0 = arith.constant 0 : i32
    return %c0_i32, %arg1 : i32, i32
  }
  func.func @transform_4(%arg0: i32, %arg1: i32) -> (i32, i32) {
    %c0_i32 = arith.constant 0 : i32
    %c0_i32_0 = arith.constant 0 : i32
    return %arg0, %c0_i32 : i32, i32
  }
  func.func @transform_5(%arg0: i32, %arg1: i32) -> (i32, i32) {
    %c0_i32 = arith.constant 0 : i32
    %c0_i32_0 = arith.constant 0 : i32
    return %arg0, %c0_i32 : i32, i32
  }
}

</mosaic_0001>

<bundles_post_ra>
// kernel: tpu_custom_call.1
= control target key start
LH: loop header
LB: loop body
LE: loop exit
PB: predicated region body
PF: predicated region fallthrough
CT: control target
= control target key end

     0   :  { %v302_v1 = vmov 0.0|0.0   ;;  %vm303_vm0 = vmmov 0   ;;  %v304_v27 = vmov 0.0   ;;  %vm32_vm1 = vcmask 7168   ;;  %s423_s2 = inlined_call_operand.vmem [shape: f32[8,128], index: 2, kind: input, shape index: {}]   ;;  %s424_s3 = inlined_call_operand.vmem [shape: f32[128,8], index: 3, kind: input, shape index: {}]   ;;  %s425_s0 = inlined_call_operand.vmem [shape: s32[8,1], index: 0, kind: input, shape index: {}]   ;;  %s426_s1 = inlined_call_operand.vmem [shape: s32[1,8], index: 1, kind: input, shape index: {}]   ;;  %s427_s5 = inlined_call_operand.vmem [shape: f32[8,1], index: 5, kind: output, shape index: {1}]   ;;  %s428_s4 = inlined_call_operand.vmem [shape: f32[8,1], index: 4, kind: output, shape index: {0}]  }
   0x1   :  { %v23_v0 = vld [vmem:[%s423_s2] sm:$0xff]  ;;  %261 = vmatprep.subr.bf16.mxu0 %v302_v1  ;;  %v39_v3 = vld [vmem:[%s424_s3 + $0x8] sm:$0xff]  ;;  %v40_v6 = vld [vmem:[%s424_s3 + $0x10] sm:$0xff]  ;;  %258 = vmatprep.mubr.msk.f32.mxu0 %vm303_vm0, %v304_v27  ;;  %v305_v33 = vmov -1e+30   ;;  %34 = vst.msk [vmem:[#allocation4] sm:$0xff] %vm32_vm1, %v304_v27 }
   0x2   :  { %v38_v2 = vld [vmem:[%s424_s3] sm:$0xff]  ;;  %v24_v4 = vmul.f32 %v23_v0, %v23_v0  ;;  %v41_v7 = vld [vmem:[%s424_s3 + $0x18] sm:$0xff]  ;;  %v43_v10 = vld [vmem:[%s424_s3 + $0x28] sm:$0xff]  ;;  %33 = vst.msk [vmem:[#allocation3] sm:$0xff] %vm32_vm1, %v305_v33  ;;  %vm137_vm2 = vcmask 64512   ;;  %v306_v37 = vmov 0  }
   0x3   :  { %v262_v5 = vpack.c.bf16 %v39_v3, %v38_v2  ;;  %v265_v8 = vpack.c.bf16 %v41_v7, %v40_v6  ;;  %v42_v9 = vld [vmem:[%s424_s3 + $0x20] sm:$0xff]  ;;  %v44_v12 = vld [vmem:[%s424_s3 + $0x30] sm:$0xff]  ;;  %v45_v13 = vld [vmem:[%s424_s3 + $0x38] sm:$0xff]  ;;  %35 = vst.msk [vmem:[#allocation5] sm:$0xff] %vm32_vm1, %v304_v27  ;;  %290 = vset.pattern.permute.xlu1 %v306_v37  ;;  %291 = vset.pattern.permute.xlu0 %v306_v37 }
   0x4   :  { %25 = vadd.xlane.f32.xlu0 %v24_v4  ;;  %v268_v11 = vpack.c.bf16 %v43_v10, %v42_v9  ;;  %v271_v14 = vpack.c.bf16 %v45_v13, %v44_v12  ;;  %v46_v15 = vld [vmem:[%s424_s3 + $0x40] sm:$0xff]  ;;  %v47_v16 = vld [vmem:[%s424_s3 + $0x48] sm:$0xff]  ;;  %v48_v18 = vld [vmem:[%s424_s3 + $0x50] sm:$0xff]  ;;  %36 = vst.msk [vmem:[#allocation6] sm:$0xff] %vm32_vm1, %v304_v27 }
   0x5   :  { %263 = vmatpush3.bf16.msra.mxu0 %v262_v5  ;;  %v274_v17 = vpack.c.bf16 %v47_v16, %v46_v15  ;;  %v49_v19 = vld [vmem:[%s424_s3 + $0x58] sm:$0xff]  ;;  %v50_v21 = vld [vmem:[%s424_s3 + $0x60] sm:$0xff]  ;;  %v51_v22 = vld [vmem:[%s424_s3 + $0x68] sm:$0xff] }
   0x6   :  { %264 = vmatprep.subr.bf16.mxu0 %v302_v1  ;;  %v277_v20 = vpack.c.bf16 %v49_v19, %v48_v18  ;;  %v280_v23 = vpack.c.bf16 %v51_v22, %v50_v21  ;;  %v52_v24 = vld [vmem:[%s424_s3 + $0x70] sm:$0xff]  ;;  %v53_v25 = vld [vmem:[%s424_s3 + $0x78] sm:$0xff]  ;;  %v124_v42 = vld [vmem:[%s425_s0] sm:$0xff] }
   0x7   :  { %v283_v26 = vpack.c.bf16 %v53_v25, %v52_v24  ;;  %v206_v45 = vld [vmem:[%s426_s1] ss:$0 sm:$0xff] }
   0x8   :  { %v145_v59 = vld [vmem:[#allocation4] sm:$0xff] }
   0x9   :  { %266 = vmatpush3.bf16.msra.mxu0 %v265_v8  ;;  %v136_v38 = vld [vmem:[#allocation3] sm:$0xff] }
   0xa   :  { %267 = vmatprep.subr.bf16.mxu0 %v302_v1 }
   0xb   :  { %v169_v55 = vld [vmem:[#allocation6] sm:$0xff] }
   0xd   :  { %269 = vmatpush3.bf16.msra.mxu0 %v268_v11 }
   0xe   :  { %270 = vmatprep.subr.bf16.mxu0 %v302_v1 }
  0x11   :  { %272 = vmatpush3.bf16.msra.mxu0 %v271_v14 }
  0x12   :  { %273 = vmatprep.subr.bf16.mxu0 %v302_v1 }
  0x15   :  { %275 = vmatpush3.bf16.msra.mxu0 %v274_v17 }
  0x16   :  { %276 = vmatprep.subr.bf16.mxu0 %v302_v1 }
  0x19   :  { %278 = vmatpush3.bf16.msra.mxu0 %v277_v20 }
  0x1a   :  { %279 = vmatprep.subr.bf16.mxu0 %v302_v1 }
  0x1d   :  { %281 = vmatpush3.bf16.msra.mxu0 %v280_v23 }
  0x1e   :  { %282 = vmatprep.subr.bf16.mxu0 %v302_v1 }
  0x21   :  { %284 = vmatpush3.bf16.msra.mxu0 %v283_v26 }
  0x91   :  { %v26_v28 = vpop.xlane.xlu0 %25 }
  0x92   :  { %v27_v29 = vmax.f32 %v26_v28, 1e-24 }
  0x94   :  { %292 = vrsqrt.f32 %v27_v29 }
  0x9e   :  { %v293_v30 = vpop.eup %292 }
  0x9f   :  { %v29_v31 = vmul.f32 2.0, %v293_v30 }
  0xa1   :  { %v30_v32 = vmul.f32 %v29_v31, %v23_v0  ;;  %v162_v0 = vld [vmem:[#allocation5] sm:$0xff] }
  0xa3   :  { %259 = vmatmul.mubr.f32.vlgmr.msra.gmra.mrb[0].mxu0 %v30_v32 }
 0x176   :  { %v120_v34 = vpop.f32.mrb[0].mxu0 }
 0x177   :  { %v260_v35 = vpop.f32.mrb[1].mxu0  ;;  %v138_v36 = vsel %vm137_vm2, %v120_v34, -inf }
 0x178   :  { %139 = vmax.xlane.f32.xlu0 %v138_v36 }
 0x205   :  { %v140_v39 = vpop.xlane.xlu0 %139 }
 0x206   :  { %v141_v40 = vmax.f32 %v136_v38, %v140_v39 }
 0x208   :  { %v142_v41 = vsub.f32 %v136_v38, %v141_v40  ;;  %161 = vst.msk [vmem:[#allocation3] sm:$0xff] %vm32_vm1, %v141_v40  ;;  %149 = vperm.xlu1 %290, %v141_v40  }
 0x20a   :  { %v143_v54 = vmul.f32 1.442695, %v142_v41 }
 0x20c   :  { %127 = vperm.xlu1 %290, %v124_v42  }
 0x20f   :  { %v179_v8 = vld [vmem:[#allocation3] sm:$0xff] }
 0x287   :  { %v150_v43 = vpop.permute.xlu1 %149 }
 0x288   :  { %v152_v44 = vsub.f32 %v120_v34, %v150_v43 }
 0x28a   :  { %v153_v46 = vmul.f32 1.442695, %v152_v44 }
 0x28b   :  { %v128_v47 = vpop.permute.xlu1 %127 }
 0x28c   :  { %294 = vpow2.f32 %v153_v46  ;;  %vm133_vm3 = vcmp.eq.s32.totalorder %v128_v47, %v206_v45 }
 0x28d   :  { %v207_v48 = vsel %vm133_vm3, 1.0, %v304_v27  ;;  %296 = vpow2.f32 %v143_v54 }
 0x28e   :  { %v170_v49 = vsel %vm137_vm2, %v207_v48, 0.0  ;;  %v163_v52 = vmul.f32 %v207_v48, %v120_v34 }
 0x28f   :  { %171 = vadd.xlane.f32.xlu1 %v170_v49 }
 0x290   :  { %v164_v53 = vsel %vm137_vm2, %v163_v52, 0.0 }
 0x296   :  { %v295_v50 = vpop.eup %294 }
 0x297   :  { %v155_v51 = vsel %vm137_vm2, %v295_v50, 0.0  ;;  %v297_v58 = vpop.eup %296 }
 0x298   :  { %156 = vadd.xlane.f32.xlu0 %v155_v51  ;;  %v146_v60 = vmul.f32 %v297_v58, %v145_v59 }
 0x29c   :  { %165 = vadd.xlane.f32.xlu0 %v164_v53 }
 0x31c   :  { %v172_v56 = vpop.xlane.xlu1 %171 }
 0x31d   :  { %v173_v57 = vadd.f32 %v172_v56, %v169_v55 }
 0x31f   :  { %174 = vst.msk [vmem:[#allocation6] sm:$0xff] %vm32_vm1, %v173_v57 }
 0x325   :  { %v157_v61 = vpop.xlane.xlu0 %156 }
 0x326   :  { %v178_v62 = vld [vmem:[#allocation6] sm:$0xff]  ;;  %v158_v63 = vadd.f32 %v157_v61, %v146_v60 }
 0x327   :  { %vm187_vm4 = vcmp.gt.f32.partialorder %v178_v62, 0.0 }
 0x328   :  { %v208_v1 = vsel %vm187_vm4, 1.0, %v304_v27  ;;  %160 = vst.msk [vmem:[#allocation4] sm:$0xff] %vm32_vm1, %v158_v63  ;;  %v188_v5 = vsel %vm187_vm4, %v178_v62, 1.0 }
 0x329   :  { %197 = vst.msk [vmem:[%s427_s5] sm:$0xff] %vm32_vm1, %v208_v1  ;;  %v166_v2 = vpop.xlane.xlu0 %165 }
 0x32a   :  { %v167_v3 = vadd.f32 %v166_v2, %v162_v0 }
 0x32c   :  { %168 = vst.msk [vmem:[#allocation5] sm:$0xff] %vm32_vm1, %v167_v3 }
 0x32f   :  { %v180_v4 = vld [vmem:[#allocation4] sm:$0xff] }
 0x330   :  { %298 = vlog2.f32 %v180_v4 }
 0x331   :  { %300 = vrcp.f32 %v188_v5 }
 0x333   :  { %v184_v11 = vld [vmem:[#allocation5] sm:$0xff] }
 0x33a   :  { %v299_v6 = vpop.eup %298 }
 0x33b   :  { %v182_v7 = vmul.f32 0.6931472, %v299_v6  ;;  %v301_v13 = vpop.eup %300 }
 0x33d   :  { %v183_v9 = vadd.f32 %v182_v7, %v179_v8 }
 0x33f   :  { %v185_v10 = vmul.f32 %v183_v9, %v178_v62 }
 0x341   :  { %v186_v12 = vsub.f32 %v184_v11, %v185_v10 }
 0x343   :  { %v190_v14 = vmul.f32 %v301_v13, %v186_v12 }
 0x345   :  { %v191_v15 = vsel %vm187_vm4, %v190_v14, 0.0 }
 0x346   :  { %v192_v16 = vsub.f32 0.0, %v191_v15 }
 0x348   :  { %v193_v17 = vmul.f32 0.5, %v192_v16 }
 0x34a   :  { %194 = vst.msk [vmem:[%s428_s4] sm:$0xff] %vm32_vm1, %v193_v17 }

</bundles_post_ra>
